<compile_context>
chip_gen: v7x
topology: tpu7x:2x2x1
jax: 0.10.0
libtpu: 0.0.40
codegen_flags: <defaults>
</compile_context>

<pallas_src>
import functools

import jax
import jax.numpy as jnp
from jax.experimental import pallas as pl
from jax.experimental.pallas import tpu as pltpu

EPS = 1e-5


def _round_up(x, m):
    return (x + m - 1) // m * m


def _geom(H, W):
    """Flat padded-spatial geometry shared by the glue code and the kernel."""
    Hp, Wp = H + 2, W + 2
    Lp = Hp * Wp                              # zero-padded plane, flattened
    Lp_pad = _round_up(Lp, 128)               # lane-aligned output width
    p_left = Wp + 1                           # halo so all 9 tap shifts are >= 0
    L_ext = _round_up(p_left + Lp_pad + Wp + 1, 128)
    # Tap (dy, dx) of output flat position o reads input flat position
    # o + (dy-1)*Wp + (dx-1); adding p_left makes every shift non-negative.
    shifts = tuple(p_left + (dy - 1) * Wp + (dx - 1)
                   for dy in range(3) for dx in range(3))
    return Hp, Wp, Lp, Lp_pad, p_left, L_ext, shifts


def _conv_bn_relu_kernel(x_ref, w_ref, g_ref, b_ref, mask_ref, o_ref,
                         patch_ref, sum_ref, sq_ref,
                         *, shifts, lp_pad, cin, count, eps):
    # x_ref    : (1, Cin, L_ext)    flat, channel-major, halo-padded input image
    # w_ref    : (Cout, 9*Cin)      conv weights, taps folded into K
    # g_ref/b_ref : (Cout, 1)       BatchNorm gamma / beta
    # mask_ref : (1, Lp_pad)        1.0 at valid interior output positions
    # o_ref    : (1, Cout, Lp_pad)  lane-dense output block
    # patch_ref: (9*Cin, Lp_pad)    VMEM im2col patch (scratch)
    # sum_ref / sq_ref : (Cout, 1)  running BN statistics (scratch, persists)
    phase = pl.program_id(0)
    img = pl.program_id(1)

    @pl.when(jnp.logical_and(phase == 0, img == 0))
    def _init_stats():
        sum_ref[...] = jnp.zeros_like(sum_ref)
        sq_ref[...] = jnp.zeros_like(sq_ref)

    x = x_ref[0]                                          # (Cin, L_ext)
    # Build the (9*Cin, Lp_pad) patch from static lane shifts of the flat
    # padded input — all in VMEM, no HBM im2col inflation.
    for t, s in enumerate(shifts):
        patch_ref[t * cin:(t + 1) * cin, :] = x[:, s:s + lp_pad]
    # Single K = 9*Cin MXU matmul; result is lane-dense (Cout, Lp_pad), f32.
    acc = jnp.dot(w_ref[...], patch_ref[...],
                  preferred_element_type=jnp.float32)
    m = mask_ref[...]                                     # (1, Lp_pad)

    @pl.when(phase == 0)
    def _accumulate_stats():
        am = acc * m                                      # zero invalid lanes
        sum_ref[...] += jnp.sum(am, axis=1, keepdims=True)
        sq_ref[...] += jnp.sum(am * acc, axis=1, keepdims=True)

    @pl.when(phase == 1)
    def _normalize_and_write():
        inv_n = 1.0 / count
        mean = sum_ref[...] * inv_n
        var = sq_ref[...] * inv_n - mean * mean           # biased variance
        scale = g_ref[...] * jax.lax.rsqrt(var + eps)     # BN folded into
        shift = b_ref[...] - mean * scale                 #   scale / shift
        y = jnp.maximum(acc * scale + shift, 0.0)         # ReLU
        # Zero the padding/garbage lanes so the next layer can reuse the flat
        # layout directly (its spatial zero-padding is already in place).
        o_ref[0] = (y * m).astype(o_ref.dtype)


def conv_bn_relu(x_ext, w_mat, gamma, beta, mask, *, H, W):
    """One Conv3x3 + BN(batch stats) + ReLU layer on the flat padded layout."""
    N, Cin, L_ext = x_ext.shape
    Cout = w_mat.shape[0]
    _, _, _, Lp_pad, _, L_ext_expected, shifts = _geom(H, W)
    assert L_ext == L_ext_expected

    kernel = functools.partial(
        _conv_bn_relu_kernel, shifts=shifts, lp_pad=Lp_pad, cin=Cin,
        count=float(N * H * W), eps=EPS)

    return pl.pallas_call(
        kernel,
        out_shape=jax.ShapeDtypeStruct((N, Cout, Lp_pad), jnp.float32),
        grid_spec=pltpu.PrefetchScalarGridSpec(
            num_scalar_prefetch=0,
            grid=(2, N),                     # (phase, image); phase 0 = stats
            in_specs=[
                pl.BlockSpec((1, Cin, L_ext), lambda p, n: (n, 0, 0)),
                pl.BlockSpec((Cout, 9 * Cin), lambda p, n: (0, 0)),
                pl.BlockSpec((Cout, 1), lambda p, n: (0, 0)),
                pl.BlockSpec((Cout, 1), lambda p, n: (0, 0)),
                pl.BlockSpec((1, Lp_pad), lambda p, n: (0, 0)),
            ],
            out_specs=pl.BlockSpec((1, Cout, Lp_pad), lambda p, n: (n, 0, 0)),
            scratch_shapes=[
                pltpu.VMEM((9 * Cin, Lp_pad), jnp.float32),   # im2col patch
                pltpu.VMEM((Cout, 1), jnp.float32),           # sum
                pltpu.VMEM((Cout, 1), jnp.float32),           # sum of squares
            ],
        ),
        compiler_params=pltpu.CompilerParams(
            # Both axes feed the shared BN-stat scratch (a reduction), so both
            # must stay sequential on one TensorCore.
            dimension_semantics=("arbitrary", "arbitrary"),
        ),
    )(x_ext, w_mat, gamma, beta, mask)


# ----------------------------- layout glue ----------------------------------

def _flat_pad_input(x_nchw):
    """NCHW -> (N, C, L_ext): zero-pad H/W, flatten, add flat halo padding."""
    N, C, H, W = x_nchw.shape
    _, _, Lp, _, p_left, L_ext, _ = _geom(H, W)
    xp = jnp.pad(x_nchw, ((0, 0), (0, 0), (1, 1), (1, 1)))
    xf = xp.reshape(N, C, Lp)
    return jnp.pad(xf, ((0, 0), (0, 0), (p_left, L_ext - p_left - Lp)))


def _extend_flat(y_flat, H, W):
    """(N, C, Lp_pad) kernel output (zero outside interior) -> (N, C, L_ext)."""
    _, _, _, Lp_pad, p_left, L_ext, _ = _geom(H, W)
    return jnp.pad(y_flat, ((0, 0), (0, 0), (p_left, L_ext - p_left - Lp_pad)))


def _extract_nchw(y_flat, H, W):
    """(N, C, Lp_pad) -> (N, C, H, W) by dropping padding positions."""
    N, C, _ = y_flat.shape
    Hp, Wp, Lp, *_ = _geom(H, W)
    return y_flat[:, :, :Lp].reshape(N, C, Hp, Wp)[:, :, 1:H + 1, 1:W + 1]


def _w_mat(w_hwio):
    """HWIO (3,3,Cin,Cout) -> (Cout, 9*Cin), column order (dy, dx, ci)."""
    kh, kw, cin, cout = w_hwio.shape
    return jnp.transpose(w_hwio, (3, 0, 1, 2)).reshape(cout, kh * kw * cin)


def _valid_mask(H, W):
    """(1, Lp_pad) mask: 1.0 at interior (valid output) flat positions."""
    Hp, Wp, Lp, Lp_pad, *_ = _geom(H, W)
    m = jnp.zeros((Hp, Wp), jnp.float32).at[1:H + 1, 1:W + 1].set(1.0)
    return jnp.pad(m.reshape(1, Lp), ((0, 0), (0, Lp_pad - Lp)))


def conv_block(x_nchw, params):
    """Equivalent of ConvBlock.forward on an NCHW input (train-mode BN)."""
    w1, g1, b1, w2, g2, b2 = params
    N, _, H, W = x_nchw.shape
    mask = _valid_mask(H, W)
    x1 = _flat_pad_input(x_nchw)
    y1 = conv_bn_relu(x1, _w_mat(w1), g1.reshape(-1, 1), b1.reshape(-1, 1),
                      mask, H=H, W=W)
    # TODO(synk): fuse both conv layers into a single pallas_call, keeping the
    # layer-1 activation (and its 1-pixel halo) resident in VMEM scratch.
    x2 = _extend_flat(y1, H, W)
    y2 = conv_bn_relu(x2, _w_mat(w2), g2.reshape(-1, 1), b2.reshape(-1, 1),
                      mask, H=H, W=W)
    return _extract_nchw(y2, H, W)


# --------------------------- params & reference ------------------------------

def init_params(key, in_channels, out_channels):
    k1, k2 = jax.random.split(key)
    # Conv2d weights (no bias), stored HWIO. Deterministic scaled-normal init.
    w1 = jax.random.normal(k1, (3, 3, in_channels, out_channels), jnp.float32)
    w1 = w1 * (2.0 / (9 * in_channels)) ** 0.5
    w2 = jax.random.normal(k2, (3, 3, out_channels, out_channels), jnp.float32)
    w2 = w2 * (2.0 / (9 * out_channels)) ** 0.5
    # BatchNorm affine params at PyTorch init: gamma=1, beta=0.
    g1 = jnp.ones((out_channels,), jnp.float32)
    b1 = jnp.zeros((out_channels,), jnp.float32)
    g2 = jnp.ones((out_channels,), jnp.float32)
    b2 = jnp.zeros((out_channels,), jnp.float32)
    return (w1, g1, b1, w2, g2, b2)


def _ref_conv_bn_relu(x_nhwc, w_hwio, gamma, beta):
    y = jax.lax.conv_general_dilated(
        x_nhwc, w_hwio, window_strides=(1, 1), padding="SAME",
        dimension_numbers=("NHWC", "HWIO", "NHWC"))
    mean = jnp.mean(y, axis=(0, 1, 2), keepdims=True)
    var = jnp.mean((y - mean) ** 2, axis=(0, 1, 2), keepdims=True)
    y = (y - mean) * jax.lax.rsqrt(var + EPS) * gamma + beta
    return jnp.maximum(y, 0.0)


def _ref_conv_block(x_nchw, params):
    w1, g1, b1, w2, g2, b2 = params
    x = jnp.transpose(x_nchw, (0, 2, 3, 1))
    y = _ref_conv_bn_relu(x, w1, g1, b1)
    y = _ref_conv_bn_relu(y, w2, g2, b2)
    return jnp.transpose(y, (0, 3, 1, 2))


if __name__ == "__main__":
    key = jax.random.PRNGKey(0)
    kx, kp = jax.random.split(key)

    N, C_IN, C_OUT, H, W = 2, 4, 8, 16, 16
    x = jax.random.normal(kx, (N, C_IN, H, W), jnp.float32)
    params = init_params(kp, C_IN, C_OUT)

    out = jax.block_until_ready(conv_block(x, params))
    assert out.shape == (N, C_OUT, H, W), out.shape

    ref = jax.block_until_ready(_ref_conv_block(x, params))
    assert jnp.allclose(out, ref, atol=1e-4, rtol=1e-4), float(
        jnp.max(jnp.abs(out - ref)))

    print("KERNEL_OK")
</pallas_src>

<mosaic_0001>
module attributes {stable_mosaic.version = 11 : i64} {
  func.func @_conv_bn_relu_kernel(%arg0: i32, %arg1: i32, %arg2: memref<1x4x512xf32, #tpu.memory_space<vmem>>, %arg3: memref<8x36xf32, #tpu.memory_space<vmem>>, %arg4: memref<8x1xf32, #tpu.memory_space<vmem>>, %arg5: memref<8x1xf32, #tpu.memory_space<vmem>>, %arg6: memref<1x384xf32, #tpu.memory_space<vmem>>, %arg7: memref<1x8x384xf32, #tpu.memory_space<vmem>>, %arg8: memref<36x384xf32, #tpu.memory_space<vmem>>, %arg9: memref<8x1xf32, #tpu.memory_space<vmem>>, %arg10: memref<8x1xf32, #tpu.memory_space<vmem>>) attributes {dimension_semantics = [#tpu.dimension_semantics<arbitrary>, #tpu.dimension_semantics<arbitrary>], iteration_bounds = array<i64: 2, 2>, scalar_prefetch = 0 : i64, scratch_operands = 3 : i64, tpu.core_type = #tpu.core_type<tc>, window_params = [{transform_indices = @transform_0, window_bounds = array<i64: 1, 4, 512>}, {pipeline_mode = #tpu.pipeline_mode<synchronous>, transform_indices = @transform_1, window_bounds = array<i64: 8, 36>}, {pipeline_mode = #tpu.pipeline_mode<synchronous>, transform_indices = @transform_2, window_bounds = array<i64: 8, 1>}, {pipeline_mode = #tpu.pipeline_mode<synchronous>, transform_indices = @transform_3, window_bounds = array<i64: 8, 1>}, {pipeline_mode = #tpu.pipeline_mode<synchronous>, transform_indices = @transform_4, window_bounds = array<i64: 1, 384>}, {transform_indices = @transform_5, window_bounds = array<i64: 1, 8, 384>}]} {
    %c0_i32 = arith.constant 0 : i32
    %0 = arith.cmpi eq, %arg0, %c0_i32 : i32
    %c0_i32_0 = arith.constant 0 : i32
    %1 = arith.cmpi eq, %arg1, %c0_i32_0 : i32
    %2 = arith.andi %0, %1 : i1
    %3 = arith.extui %2 : i1 to i32
    %c0_i32_1 = arith.constant 0 : i32
    %4 = arith.cmpi ne, %3, %c0_i32_1 : i32
    scf.if %4 {
      %cst_23 = arith.constant 0.000000e+00 : f32
      %35 = vector.broadcast %cst_23 : f32 to vector<8x1xf32>
      %c0_24 = arith.constant 0 : index
      %c0_25 = arith.constant 0 : index
      %36 = vector.load %arg9[%c0_24, %c0_25] : memref<8x1xf32, #tpu.memory_space<vmem>>, vector<8x1xf32>
      tpu.vector_store %arg9[%c0_24, %c0_25], %35 {strides = array<i32>} : memref<8x1xf32, #tpu.memory_space<vmem>>, vector<8x1xf32>,
      %cst_26 = arith.constant 0.000000e+00 : f32
      %37 = vector.broadcast %cst_26 : f32 to vector<8x1xf32>
      %c0_27 = arith.constant 0 : index
      %c0_28 = arith.constant 0 : index
      %38 = vector.load %arg10[%c0_27, %c0_28] : memref<8x1xf32, #tpu.memory_space<vmem>>, vector<8x1xf32>
      tpu.vector_store %arg10[%c0_27, %c0_28], %37 {strides = array<i32>} : memref<8x1xf32, #tpu.memory_space<vmem>>, vector<8x1xf32>,
    } else {
    }
    %c0 = arith.constant 0 : index
    %c0_2 = arith.constant 0 : index
    %c0_3 = arith.constant 0 : index
    %5 = vector.load %arg2[%c0, %c0_2, %c0_3] : memref<1x4x512xf32, #tpu.memory_space<vmem>>, vector<1x4x512xf32>
    %6 = vector.shape_cast %5 : vector<1x4x512xf32> to vector<4x512xf32>
    %7 = vector.extract_strided_slice %6 {offsets = [0, 0], sizes = [4, 384], strides = [1, 1]} : vector<4x512xf32> to vector<4x384xf32>
    %c0_4 = arith.constant 0 : index
    %c0_5 = arith.constant 0 : index
    %8 = vector.load %arg8[%c0_4, %c0_5] : memref<36x384xf32, #tpu.memory_space<vmem>>, vector<4x384xf32>
    tpu.vector_store %arg8[%c0_4, %c0_5], %7 {strides = array<i32>} : memref<36x384xf32, #tpu.memory_space<vmem>>, vector<4x384xf32>,
    %9 = vector.extract_strided_slice %6 {offsets = [0, 1], sizes = [4, 384], strides = [1, 1]} : vector<4x512xf32> to vector<4x384xf32>
    %c4 = arith.constant 4 : index
    %c0_6 = arith.constant 0 : index
    %10 = vector.load %arg8[%c4, %c0_6] : memref<36x384xf32, #tpu.memory_space<vmem>>, vector<4x384xf32>
    tpu.vector_store %arg8[%c4, %c0_6], %9 {strides = array<i32>} : memref<36x384xf32, #tpu.memory_space<vmem>>, vector<4x384xf32>,
    %11 = vector.extract_strided_slice %6 {offsets = [0, 2], sizes = [4, 384], strides = [1, 1]} : vector<4x512xf32> to vector<4x384xf32>
    %c8 = arith.constant 8 : index
    %c0_7 = arith.constant 0 : index
    %12 = vector.load %arg8[%c8, %c0_7] : memref<36x384xf32, #tpu.memory_space<vmem>>, vector<4x384xf32>
    tpu.vector_store %arg8[%c8, %c0_7], %11 {strides = array<i32>} : memref<36x384xf32, #tpu.memory_space<vmem>>, vector<4x384xf32>,
    %13 = vector.extract_strided_slice %6 {offsets = [0, 18], sizes = [4, 384], strides = [1, 1]} : vector<4x512xf32> to vector<4x384xf32>
    %c12 = arith.constant 12 : index
    %c0_8 = arith.constant 0 : index
    %14 = vector.load %arg8[%c12, %c0_8] : memref<36x384xf32, #tpu.memory_space<vmem>>, vector<4x384xf32>
    tpu.vector_store %arg8[%c12, %c0_8], %13 {strides = array<i32>} : memref<36x384xf32, #tpu.memory_space<vmem>>, vector<4x384xf32>,
    %15 = vector.extract_strided_slice %6 {offsets = [0, 19], sizes = [4, 384], strides = [1, 1]} : vector<4x512xf32> to vector<4x384xf32>
    %c16 = arith.constant 16 : index
    %c0_9 = arith.constant 0 : index
    %16 = vector.load %arg8[%c16, %c0_9] : memref<36x384xf32, #tpu.memory_space<vmem>>, vector<4x384xf32>
    tpu.vector_store %arg8[%c16, %c0_9], %15 {strides = array<i32>} : memref<36x384xf32, #tpu.memory_space<vmem>>, vector<4x384xf32>,
    %17 = vector.extract_strided_slice %6 {offsets = [0, 20], sizes = [4, 384], strides = [1, 1]} : vector<4x512xf32> to vector<4x384xf32>
    %c20 = arith.constant 20 : index
    %c0_10 = arith.constant 0 : index
    %18 = vector.load %arg8[%c20, %c0_10] : memref<36x384xf32, #tpu.memory_space<vmem>>, vector<4x384xf32>
    tpu.vector_store %arg8[%c20, %c0_10], %17 {strides = array<i32>} : memref<36x384xf32, #tpu.memory_space<vmem>>, vector<4x384xf32>,
    %19 = vector.extract_strided_slice %6 {offsets = [0, 36], sizes = [4, 384], strides = [1, 1]} : vector<4x512xf32> to vector<4x384xf32>
    %c24 = arith.constant 24 : index
    %c0_11 = arith.constant 0 : index
    %20 = vector.load %arg8[%c24, %c0_11] : memref<36x384xf32, #tpu.memory_space<vmem>>, vector<4x384xf32>
    tpu.vector_store %arg8[%c24, %c0_11], %19 {strides = array<i32>} : memref<36x384xf32, #tpu.memory_space<vmem>>, vector<4x384xf32>,
    %21 = vector.extract_strided_slice %6 {offsets = [0, 37], sizes = [4, 384], strides = [1, 1]} : vector<4x512xf32> to vector<4x384xf32>
    %c28 = arith.constant 28 : index
    %c0_12 = arith.constant 0 : index
    %22 = vector.load %arg8[%c28, %c0_12] : memref<36x384xf32, #tpu.memory_space<vmem>>, vector<4x384xf32>
    tpu.vector_store %arg8[%c28, %c0_12], %21 {strides = array<i32>} : memref<36x384xf32, #tpu.memory_space<vmem>>, vector<4x384xf32>,
    %23 = vector.extract_strided_slice %6 {offsets = [0, 38], sizes = [4, 384], strides = [1, 1]} : vector<4x512xf32> to vector<4x384xf32>
    %c32 = arith.constant 32 : index
    %c0_13 = arith.constant 0 : index
    %24 = vector.load %arg8[%c32, %c0_13] : memref<36x384xf32, #tpu.memory_space<vmem>>, vector<4x384xf32>
    tpu.vector_store %arg8[%c32, %c0_13], %23 {strides = array<i32>} : memref<36x384xf32, #tpu.memory_space<vmem>>, vector<4x384xf32>,
    %c0_14 = arith.constant 0 : index
    %c0_15 = arith.constant 0 : index
    %25 = vector.load %arg3[%c0_14, %c0_15] : memref<8x36xf32, #tpu.memory_space<vmem>>, vector<8x36xf32>
    %c0_16 = arith.constant 0 : index
    %c0_17 = arith.constant 0 : index
    %26 = vector.load %arg8[%c0_16, %c0_17] : memref<36x384xf32, #tpu.memory_space<vmem>>, vector<36x384xf32>
    %cst = arith.constant dense<0.000000e+00> : vector<8x384xf32>
    %27 = tpu.matmul %25, %26, %cst {dimension_numbers = #tpu.dot_dimension_numbers<[1], [0], [0], [1], [0, 0, 1, 1], [], []>} : vector<8x36xf32>, vector<36x384xf32>, vector<8x384xf32> -> vector<8x384xf32>
    %c0_18 = arith.constant 0 : index
    %c0_19 = arith.constant 0 : index
    %28 = vector.load %arg6[%c0_18, %c0_19] : memref<1x384xf32, #tpu.memory_space<vmem>>, vector<1x384xf32>
    %c0_i32_20 = arith.constant 0 : i32
    %29 = arith.cmpi eq, %arg0, %c0_i32_20 : i32
    %30 = arith.extui %29 : i1 to i32
    %c0_i32_21 = arith.constant 0 : i32
    %31 = arith.cmpi ne, %30, %c0_i32_21 : i32
    scf.if %31 {
      %35 = vector.broadcast %28 : vector<1x384xf32> to vector<8x384xf32>
      %36 = arith.mulf %27, %35 : vector<8x384xf32>
      %c0_23 = arith.constant 0 : index
      %c0_24 = arith.constant 0 : index
      %37 = vector.load %arg9[%c0_23, %c0_24] : memref<8x1xf32, #tpu.memory_space<vmem>>, vector<8x1xf32>
      %cst_25 = arith.constant dense<0.000000e+00> : vector<8xf32>
      %38 = vector.multi_reduction <add>, %36, %cst_25 [1] : vector<8x384xf32> to vector<8xf32>
      %39 = vector.shape_cast %38 : vector<8xf32> to vector<8x1xf32>
      %40 = arith.addf %37, %39 : vector<8x1xf32>
      %c0_26 = arith.constant 0 : index
      %c0_27 = arith.constant 0 : index
      %41 = vector.load %arg9[%c0_26, %c0_27] : memref<8x1xf32, #tpu.memory_space<vmem>>, vector<8x1xf32>
      tpu.vector_store %arg9[%c0_26, %c0_27], %40 {strides = array<i32>} : memref<8x1xf32, #tpu.memory_space<vmem>>, vector<8x1xf32>,
      %c0_28 = arith.constant 0 : index
      %c0_29 = arith.constant 0 : index
      %42 = vector.load %arg10[%c0_28, %c0_29] : memref<8x1xf32, #tpu.memory_space<vmem>>, vector<8x1xf32>
      %43 = arith.mulf %36, %27 : vector<8x384xf32>
      %cst_30 = arith.constant dense<0.000000e+00> : vector<8xf32>
      %44 = vector.multi_reduction <add>, %43, %cst_30 [1] : vector<8x384xf32> to vector<8xf32>
      %45 = vector.shape_cast %44 : vector<8xf32> to vector<8x1xf32>
      %46 = arith.addf %42, %45 : vector<8x1xf32>
      %c0_31 = arith.constant 0 : index
      %c0_32 = arith.constant 0 : index
      %47 = vector.load %arg10[%c0_31, %c0_32] : memref<8x1xf32, #tpu.memory_space<vmem>>, vector<8x1xf32>
      tpu.vector_store %arg10[%c0_31, %c0_32], %46 {strides = array<i32>} : memref<8x1xf32, #tpu.memory_space<vmem>>, vector<8x1xf32>,
    } else {
    }
    %c1_i32 = arith.constant 1 : i32
    %32 = arith.cmpi eq, %arg0, %c1_i32 : i32
    %33 = arith.extui %32 : i1 to i32
    %c0_i32_22 = arith.constant 0 : i32
    %34 = arith.cmpi ne, %33, %c0_i32_22 : i32
    scf.if %34 {
      %c0_23 = arith.constant 0 : index
      %c0_24 = arith.constant 0 : index
      %35 = vector.load %arg9[%c0_23, %c0_24] : memref<8x1xf32, #tpu.memory_space<vmem>>, vector<8x1xf32>
      %cst_25 = arith.constant 0.001953125 : f32
      %36 = vector.broadcast %cst_25 : f32 to vector<8x1xf32>
      %37 = arith.mulf %35, %36 : vector<8x1xf32>
      %c0_26 = arith.constant 0 : index
      %c0_27 = arith.constant 0 : index
      %38 = vector.load %arg10[%c0_26, %c0_27] : memref<8x1xf32, #tpu.memory_space<vmem>>, vector<8x1xf32>
      %cst_28 = arith.constant 0.001953125 : f32
      %39 = vector.broadcast %cst_28 : f32 to vector<8x1xf32>
      %40 = arith.mulf %38, %39 : vector<8x1xf32>
      %41 = arith.mulf %37, %37 : vector<8x1xf32>
      %42 = arith.subf %40, %41 : vector<8x1xf32>
      %c0_29 = arith.constant 0 : index
      %c0_30 = arith.constant 0 : index
      %43 = vector.load %arg4[%c0_29, %c0_30] : memref<8x1xf32, #tpu.memory_space<vmem>>, vector<8x1xf32>
      %cst_31 = arith.constant 9.99999974E-6 : f32
      %44 = vector.broadcast %cst_31 : f32 to vector<8x1xf32>
      %45 = arith.addf %42, %44 : vector<8x1xf32>
      %46 = math.rsqrt %45 : vector<8x1xf32>
      %47 = arith.mulf %43, %46 : vector<8x1xf32>
      %c0_32 = arith.constant 0 : index
      %c0_33 = arith.constant 0 : index
      %48 = vector.load %arg5[%c0_32, %c0_33] : memref<8x1xf32, #tpu.memory_space<vmem>>, vector<8x1xf32>
      %49 = arith.mulf %37, %47 : vector<8x1xf32>
      %50 = arith.subf %48, %49 : vector<8x1xf32>
      %51 = vector.broadcast %47 : vector<8x1xf32> to vector<8x384xf32>
      %52 = arith.mulf %27, %51 : vector<8x384xf32>
      %53 = vector.broadcast %50 : vector<8x1xf32> to vector<8x384xf32>
      %54 = arith.addf %52, %53 : vector<8x384xf32>
      %cst_34 = arith.constant 0.000000e+00 : f32
      %55 = vector.broadcast %cst_34 : f32 to vector<8x384xf32>
      %56 = arith.maximumf %54, %55 : vector<8x384xf32>
      %57 = vector.broadcast %28 : vector<1x384xf32> to vector<8x384xf32>
      %58 = arith.mulf %56, %57 : vector<8x384xf32>
      %c0_35 = arith.constant 0 : index
      %c0_36 = arith.constant 0 : index
      %c0_37 = arith.constant 0 : index
      %59 = vector.load %arg7[%c0_35, %c0_36, %c0_37] : memref<1x8x384xf32, #tpu.memory_space<vmem>>, vector<1x8x384xf32>
      %60 = vector.shape_cast %59 : vector<1x8x384xf32> to vector<8x384xf32>
      %61 = vector.shape_cast %58 : vector<8x384xf32> to vector<1x8x384xf32>
      tpu.vector_store %arg7[%c0_35, %c0_36, %c0_37], %61 {strides = array<i32>} : memref<1x8x384xf32, #tpu.memory_space<vmem>>, vector<1x8x384xf32>,
    } else {
    }
    return
  }
  func.func @transform_0(%arg0: i32, %arg1: i32) -> (i32, i32, i32) {
    %c0_i32 = arith.constant 0 : i32
    %c0_i32_0 = arith.constant 0 : i32
    %c0_i32_1 = arith.constant 0 : i32
    return %arg1, %c0_i32, %c0_i32_0 : i32, i32, i32
  }
  func.func @transform_1(%arg0: i32, %arg1: i32) -> (i32, i32) {
    %c0_i32 = arith.constant 0 : i32
    %c0_i32_0 = arith.constant 0 : i32
    %c0_i32_1 = arith.constant 0 : i32
    return %c0_i32, %c0_i32_0 : i32, i32
  }
  func.func @transform_2(%arg0: i32, %arg1: i32) -> (i32, i32) {
    %c0_i32 = arith.constant 0 : i32
    %c0_i32_0 = arith.constant 0 : i32
    %c0_i32_1 = arith.constant 0 : i32
    return %c0_i32, %c0_i32_0 : i32, i32
  }
  func.func @transform_3(%arg0: i32, %arg1: i32) -> (i32, i32) {
    %c0_i32 = arith.constant 0 : i32
    %c0_i32_0 = arith.constant 0 : i32
    %c0_i32_1 = arith.constant 0 : i32
    return %c0_i32, %c0_i32_0 : i32, i32
  }
  func.func @transform_4(%arg0: i32, %arg1: i32) -> (i32, i32) {
    %c0_i32 = arith.constant 0 : i32
    %c0_i32_0 = arith.constant 0 : i32
    %c0_i32_1 = arith.constant 0 : i32
    return %c0_i32, %c0_i32_0 : i32, i32
  }
  func.func @transform_5(%arg0: i32, %arg1: i32) -> (i32, i32, i32) {
    %c0_i32 = arith.constant 0 : i32
    %c0_i32_0 = arith.constant 0 : i32
    %c0_i32_1 = arith.constant 0 : i32
    return %arg1, %c0_i32, %c0_i32_0 : i32, i32, i32
  }
}

</mosaic_0001>

<bundles_post_ra>
// kernel: tpu_custom_call.1
= control target key start
LH: loop header
LB: loop body
LE: loop exit
PB: predicated region body
PF: predicated region fallthrough
CT: control target
= control target key end

     0   :  { %10 = vsyncpa [#allocation6], 0  ;;  %s1359_s0 = inlined_call_operand.hbm [shape: f32[2,4,512], index: 0, kind: input, shape index: {}]   ;;  %s1360_s1 = inlined_call_operand.vmem [shape: f32[8,36], index: 1, kind: input, shape index: {}]   ;;  %s1361_s2 = inlined_call_operand.vmem [shape: f32[8,1], index: 2, kind: input, shape index: {}]   ;;  %s1362_s3 = inlined_call_operand.vmem [shape: f32[8,1], index: 3, kind: input, shape index: {}]   ;;  %s1363_s4 = inlined_call_operand.vmem [shape: f32[1,384], index: 4, kind: input, shape index: {}]   ;;  %s1364_s5 = inlined_call_operand.hbm [shape: f32[2,8,384], index: 5, kind: output, shape index: {}]  }
   0x1   :  { %12 = vsyncpa [#allocation6 + $0x1], 0 }
   0x2   :  { %13 = vsyncpa [#allocation7], 0 }
   0x3   :  { %15 = vsyncpa [#allocation7 + $0x1], 0  ;;  %s1112_s18 = smov 0   ;;  %s1114_s19 = smov 0  }
   0x4   :  { %s1116_s20 = smov 0   ;;  %s1118_s21 = smov 0  }
   0x5   :  { %s1120_s22 = smov 0   ;;  %s1122_s23 = smov 0  }
   0x6   :  { %s1124_s24 = smov 0   ;;  %s1126_s25 = smov 0  }
   0x7 LB: > { %s784_s26 = sadd.s32 4294967295, %s1065_s25   ;;  %s785_s27 = sadd.s32 4294967294, %s1065_s25   ;;  %s1065_s25 = sphi %s1126_s25, %s21_s25   ;;  %s1061_s24 = sphi %s1124_s24, %s1381_s24   ;;  %s1057_s23 = sphi %s1122_s23, %s1380_s23   ;;  %s1053_s22 = sphi %s1120_s22, %s1379_s22   ;;  %s1049_s21 = sphi %s1118_s21, %s1378_s21   ;;  %s1045_s20 = sphi %s1116_s20, %s1377_s20   ;;  %s1041_s19 = sphi %s1114_s19, %s1376_s19   ;;  %s1037_s18 = sphi %s1112_s18, %s1375_s18  }
   0x8   : > { %s30_s28 = sadd.s32 1, %s1057_s23  ;;  %s33_s29 = sadd.s32 1, %s1061_s24 }
   0x9   : > { %p31_p0 = scmp.ge.s32.totalorder %s30_s28, 2  ;;  %s40_s30 = sadd.s32 1, %s1045_s20 }
   0xa   : > { %p47_p1 = scmp.ne.s32.totalorder %s1045_s20, %s1041_s19  ;;  %p48_p2 = scmp.eq.s32.totalorder %s1065_s25, 0 }
   0xb   : > { %s1383_s28 = smov (%p31_p0, %s30_s28), 0  ;;  %s1385_s29 = smov (!%p31_p0, %s33_s29), %s1061_s24 }
   0xc   : > { %s37_s6 = ssub.s32 %s1057_s23, %s1383_s28  ;;  %p1168_p3 = por %p48_p2, %p47_p1 }
   0xd   : > { %p35_p4 = scmp.ge.s32.totalorder %s1385_s29, 2  ;;  %p38_p5 = scmp.eq.s32.totalorder %s37_s6, 0 }
   0xe   : > { %p53_p6 = scmp.ne.s32.totalorder %s1041_s19, %s1037_s18  ;;  %p54_p7 = scmp.eq.s32.totalorder %s784_s26, 0 }
   0xf   : > { %s1387_s29 = smov (%p35_p4, %s1385_s29), 0  ;;  %p161_p9 = scmp.eq.s32.totalorder %s784_s26, 3 }
  0x10   : > { %s1177_s8 = scalar_select %p38_p5, %s1045_s20, %s40_s30  }
  0x11   : > { %p1179_p8 = por %p54_p7, %p53_p6  ;;  %p167_p10 = scmp.eq.s32.totalorder %s785_s27, 3 }
  0x12   : > { %p1186_p11 = por %p161_p9, %p47_p1  ;;  %p851_p12 = scmp.lt.s32.totalorder %s1065_s25, 4 }
  0x13   : > { %p1191_p13 = por %p167_p10, %p53_p6  ;;  %s199_s12 = sand.u32 1, %s1045_s20  }
  0x14   : > { %s1368_s10 = scalar_select %p1186_p11, 1, 0 }
  0x15   : > { %s1369_s11 = scalar_select %p1191_p13, 1, 0 }
  0x16   : > { %s788_s13 = sshll.u32 %s199_s12, 4  ;;  %s803_s14 = sshll.u32 %s1057_s23, 8 }
  0x17   : > { %s1200_s17 = scalar_lea.hbm %s1359_s0, %s803_s14  ;;  %s203_s26 = scalar_lea.vmem [#allocation5], %s788_s13 }
  0x18   : > { %s211_s27 = sshll.u32 %s203_s26, 4  ;;  %p1206_p0 = pnand %p851_p12, %p1168_p3  ;;  %s1202_s27 = int_to_ptr.vmem [resolvable:$true] %s211_s27 }
  0x19   : > { %s200_s6 = scalar_lea.sflag [#allocation6], %s199_s12  ;;  %s937_s14 = scalar_lea.hbm %s1200_s17, 256 }
  0x1a   : > { %p938_p4 = scmp.ne.s32.totalorder %s1200_s17, %s937_s14  ;;  %p939_p5 = pneg %p1206_p0 }
  0x1b   : > { %s942_s7 = scalar_lea.hbm %s1359_s0, 512  ;;  %p943_p3 = scmp.lt.u32.totalorder %s1200_s17, %s1359_s0 }
  0x1c   : > { %p940_p6 = pnand %p939_p5, %p938_p4  ;;  %p944_p9 = scmp.lt.u32.totalorder %s942_s7, %s937_s14 }
  0x1d   : > { %p946_p12 = scmp.lt.u32.totalorder %s937_s14, %s1200_s17 }
  0x1e   : > { %p941_p7 = pneg %p940_p6  ;;  %p945_p10 = por %p944_p9, %p943_p3 }
  0x20   : > { %p947_p1 = por %p946_p12, %p945_p10 }
  0x22   : > { %p948_p2 = pnand %p947_p1, %p941_p7 }
  0x24   : > { %951 = shalt.err (!%p948_p2)
}
  0x25   : > { %s952_s12 = scalar_lea.vmem %s1202_s27, 256  ;;  %s1067_s13 = smov [#allocation5]  }
  0x26   : > { %p953_p4 = scmp.ne.s32.totalorder %s1202_s27, %s952_s12  ;;  %s957_s15 = sshll.u32 %s1067_s13, 4  ;;  %s958_s15 = int_to_ptr.vmem [resolvable:$false] %s957_s15 }
  0x27   : > { %s959_s16 = scalar_lea.vmem %s958_s15, 512  ;;  %p960_p11 = scmp.lt.s32.totalorder %s1202_s27, %s958_s15 }
  0x28   : > { %p955_p6 = pnand %p953_p4, %p939_p5  ;;  %p961_p3 = scmp.lt.s32.totalorder %s959_s16, %s952_s12 }
  0x2a   : > { %p956_p13 = pneg %p955_p6  ;;  %p962_p9 = por %p961_p3, %p960_p11 }
  0x2c   : > { %p963_p10 = pnand %p962_p9, %p956_p13 }
  0x2e   : > { %966 = shalt.err (!%p963_p10)
}
  0x2f   : > { %846 = dma.hbm_to_vmem [thread:$0]  (!%p1206_p0), %s1200_s17, 256, %s1202_s27, %s200_s6  }
  0x30   : > { %p1371_p1 = scmp.lt.s32.totalorder %s1065_s25, 5  ;;  %p1372_p2 = scmp.ge.s32.totalorder %s1065_s25, 1 }
  0x32   : > { %p217_p5 = pnand %p1372_p2, %p1371_p1 }
  0x33   : > { %s1242_s14 = sand.u32 (!%p217_p5), 1, %s1041_s19  }
  0x34   : > { %220 = sbr.rel (%p217_p5) target bundleno = 817 (0x331), region = 40  ;;  %s792_s7 = sshll.u32 (!%p217_p5), %s1242_s14, 4 }
  0x35   : > { %s223_s26 = scalar_lea.sflag (!%p217_p5), [#allocation6], %s1242_s14  ;;  %s226_s12 = scalar_lea.vmem (!%p217_p5), [#allocation5], %s792_s7 }
  0x3b   : > { %1028 = dma.done.wait (%p1179_p8), %s223_s26, 256  }
  0x3c   : > { %1030 = vsyncadd (%p1179_p8), %s223_s26, 4294967040  ;;  %s837_s17 = smul.u32 24, %s1242_s14  ;;  %p253_p11 = scmp.eq.s32.totalorder %s1053_s22, 0 }
  0x3d   : > { %p254_p13 = scmp.eq.s32.totalorder %s1049_s21, 0 }
  0x3e   : > { %s1253_s27 = scalar_lea.vmem [#allocation8], %s837_s17 }
  0x3f   : > { %p255_p0 = pnand %p254_p13, %p253_p11 }
  0x40   : > { %vm259_vm0 = vcmask (!%p255_p0), 7168   ;;  %v1068_v0 = vmov (!%p255_p0), 0.0  }
  0x41   : > { %258 = sbr.rel (%p255_p0) target bundleno = 72 (0x48), region = 48  ;;  %260 = vst.msk [vmem:[#allocation3] sm:$0xff] (!%p255_p0), %vm259_vm0, %v1068_v0  ;;  %261 = vst.msk [vmem:[#allocation4] sm:$0xff] (!%p255_p0), %vm259_vm0, %v1068_v0 }
  0x48 PF: > { %v262_v1 = vld [vmem:[%s226_s12] sm:$0xff]  ;;  %v263_v2 = vld [vmem:[%s226_s12 + $0x8] sm:$0xff]  ;;  %s1069_s30 = smov 127   ;;  %s1070_s9 = smov 126   ;;  %v1072_v7 = vmov 0.0|0.0   ;;  %v1078_v8 = vmov 0.0  }
  0x49   : > { %275 = vrot.lane.b32.xlu0 %v262_v1, %s1069_s30  ;;  %268 = vst [vmem:[#allocation2] sm:$0xf] %v262_v1  ;;  %v266_v3 = vcombine.high %v262_v1, %v262_v1  ;;  %v272_v4 = vcombine.low %v263_v2, %v263_v2  ;;  %270 = vst [vmem:[#allocation2 + $0x10] sm:$0xf] %v263_v2  ;;  %s1071_s6 = smov 110   ;;  %v271_v5 = vcombine.low %v262_v1, %v262_v1  ;;  %s1073_s13 = smov 109  }
  0x4a   : > { %v291_v6 = vcombine.high %v263_v2, %v263_v2  ;;  %831 = vmatprep.subr.bf16.mxu1 %v1072_v7  ;;  %s1074_s15 = smov 108   ;;  %s1075_s16 = smov 92   ;;  %512 = vmatprep.mubr.f32.mxu0 %v1078_v8  ;;  %vm1079_vm1 = vmmov 0   ;;  %vm281_vm2 = vcmask 1039360   ;;  %vm300_vm3 = vcmask 1031168  }
  0x4b   : > { %294 = vrot.lane.b32.xlu1 %v266_v3, %s1070_s9  ;;  %269 = vst [vmem:[#allocation2 + $0x8] sm:$0xf] %v266_v3  ;;  %s1076_s7 = smov 91   ;;  %s1077_s26 = smov 90   ;;  %820 = vmatprep.mubr.msk.f32.mxu1 %vm1079_vm1, %v1078_v8  ;;  %vm318_vm4 = vcmask 900096   ;;  %vm336_vm5 = vcmask 891904  }
  0x4c   : > { %vm354_vm6 = vcmask 883712   ;;  %vm372_vm7 = vcmask 752640   ;;  %vm390_vm8 = vcmask 744448   ;;  %vm408_vm9 = vcmask 736256   ;;  %p798_p8 = scmp.ne.s32.totalorder %s1053_s22, 0 }
  0x4d   : > { %277 = vrot.lane.b32.xlu0 %v272_v4, %s1069_s30  ;;  %vm438_vm10 = vcmask 1043456   ;;  %vm434_vm11 = vcmask 293888   ;;  %vm618_vm12 = vcmask (!%p798_p8), 7168  }
  0x4f   : > { %296 = vrot.lane.b32.xlu1 %v263_v2, %s1070_s9 }
  0x51   : > { %312 = vrot.lane.b32.xlu0 %v262_v1, %s1071_s6 }
  0x53   : > { %314 = vrot.lane.b32.xlu1 %v272_v4, %s1071_s6 }
  0x55   : > { %273 = vrot.lane.b32.xlu0 %v271_v5, %s1069_s30 }
  0x57   : > { %279 = vrot.lane.b32.xlu1 %v263_v2, %s1069_s30 }
  0x59   : > { %292 = vrot.lane.b32.xlu0 %v262_v1, %s1070_s9 }
  0x5b   : > { %298 = vrot.lane.b32.xlu1 %v291_v6, %s1070_s9 }
  0x5d   : > { %310 = vrot.lane.b32.xlu0 %v271_v5, %s1071_s6 }
  0x5f   : > { %316 = vrot.lane.b32.xlu1 %v263_v2, %s1071_s6 }
  0x61   : > { %330 = vrot.lane.b32.xlu0 %v266_v3, %s1073_s13 }
  0x63   : > { %332 = vrot.lane.b32.xlu1 %v263_v2, %s1073_s13 }
  0x65   : > { %348 = vrot.lane.b32.xlu0 %v262_v1, %s1074_s15 }
  0x67   : > { %350 = vrot.lane.b32.xlu1 %v272_v4, %s1074_s15 }
  0x69   : > { %366 = vrot.lane.b32.xlu0 %v266_v3, %s1075_s16 }
  0x6b   : > { %368 = vrot.lane.b32.xlu1 %v263_v2, %s1075_s16 }
  0x6d   : > { %384 = vrot.lane.b32.xlu0 %v262_v1, %s1076_s7 }
  0x6f   : > { %386 = vrot.lane.b32.xlu1 %v272_v4, %s1076_s7 }
  0x71   : > { %328 = vrot.lane.b32.xlu0 %v262_v1, %s1073_s13 }
  0x73   : > { %334 = vrot.lane.b32.xlu1 %v291_v6, %s1073_s13 }
  0x75   : > { %346 = vrot.lane.b32.xlu0 %v271_v5, %s1074_s15 }
  0x77   : > { %352 = vrot.lane.b32.xlu1 %v263_v2, %s1074_s15 }
  0x79   : > { %364 = vrot.lane.b32.xlu0 %v262_v1, %s1075_s16 }
  0x7b   : > { %370 = vrot.lane.b32.xlu1 %v291_v6, %s1075_s16 }
  0x7d   : > { %382 = vrot.lane.b32.xlu0 %v271_v5, %s1076_s7 }
  0x7f   : > { %388 = vrot.lane.b32.xlu1 %v263_v2, %s1076_s7 }
  0x81   : > { %402 = vrot.lane.b32.xlu0 %v266_v3, %s1077_s26 }
  0x83   : > { %404 = vrot.lane.b32.xlu1 %v263_v2, %s1077_s26 }
  0x85   : > { %400 = vrot.lane.b32.xlu0 %v262_v1, %s1077_s26 }
  0x87   : > { %406 = vrot.lane.b32.xlu1 %v291_v6, %s1077_s26 }
  0xbb   : > { %v276_v9 = vpop.permute.xlu0 %275 }
  0xbd   : > { %v295_v10 = vpop.permute.xlu1 %294 }
  0xbf   : > { %v278_v11 = vpop.permute.xlu0 %277 }
  0xc0   : > { %v283_v12 = vsel %vm281_vm2, %v276_v9, %v278_v11 }
  0xc1   : > { %289 = vst [vmem:[#allocation2 + $0x8] sm:$0xf0] %v283_v12  ;;  %v297_v13 = vpop.permute.xlu1 %296 }
  0xc2   : > { %v302_v14 = vsel %vm300_vm3, %v295_v10, %v297_v13 }
  0xc3   : > { %308 = vst [vmem:[#allocation2 + $0x20] sm:$0xf] %v302_v14  ;;  %v313_v15 = vpop.permute.xlu0 %312 }
  0xc5   : > { %v315_v16 = vpop.permute.xlu1 %314 }
  0xc6   : > { %v320_v17 = vsel %vm318_vm4, %v313_v15, %v315_v16 }
  0xc7   : > { %326 = vst [vmem:[#allocation2 + $0x20] sm:$0xf0] %v320_v17  ;;  %v274_v18 = vpop.permute.xlu0 %273 }
  0xc8   : > { %v282_v19 = vsel %vm281_vm2, %v274_v18, %v276_v9  ;;  %v420_v26 = vld [vmem:[#allocation2 + $0x8] sm:$0xff] }
  0xc9   : > { %288 = vst [vmem:[#allocation2] sm:$0xf0] %v282_v19  ;;  %v280_v20 = vpop.permute.xlu1 %279 }
  0xca   : > { %v284_v21 = vsel %vm281_vm2, %v278_v11, %v280_v20 }
  0xcb   : > { %290 = vst [vmem:[#allocation2 + $0x10] sm:$0xf0] %v284_v21  ;;  %v293_v22 = vpop.permute.xlu0 %292  ;;  %v418_v21 = vld [vmem:[%s1360_s1] sm:$0xff] }
  0xcc   : > { %v301_v23 = vsel %vm300_vm3, %v293_v22, %v295_v10 }
  0xcd   : > { %307 = vst [vmem:[#allocation2 + $0x18] sm:$0xf] %v301_v23  ;;  %v299_v24 = vpop.permute.xlu1 %298 }
  0xce   : > { %v303_v25 = vsel %vm300_vm3, %v297_v13, %v299_v24  ;;  %v423_v27 = vld [vmem:[#allocation2 + $0x20] sm:$0xff] }
  0xcf   : > { %309 = vst [vmem:[#allocation2 + $0x28] sm:$0xf] %v303_v25  ;;  %v311_v28 = vpop.permute.xlu0 %310  ;;  %v823_v29 = vpack.c.bf16 %v423_v27, %v420_v26  ;;  %v1287_v24 = vld [vmem:[%s1363_s4] sm:$0x7] }
  0xd0   : > { %v319_v30 = vsel %vm318_vm4, %v311_v28, %v313_v15  ;;  %v419_v37 = vld [vmem:[#allocation2] sm:$0xff]  ;;  %v594_v28 = vlaneseq (!%p798_p8) }
  0xd1   : > { %325 = vst [vmem:[#allocation2 + $0x18] sm:$0xf0] %v319_v30  ;;  %v317_v31 = vpop.permute.xlu1 %316  ;;  %824 = vmatprep.subr.bf16.mxu0 %v823_v29 }
  0xd2   : > { %v321_v32 = vsel %vm318_vm4, %v315_v16, %v317_v31  ;;  %v421_v42 = vld [vmem:[#allocation2 + $0x10] sm:$0xff]  ;;  %v595_v29 = vshrl.u32 (!%p798_p8), %v594_v28, 7 }
  0xd3   : > { %327 = vst [vmem:[#allocation2 + $0x28] sm:$0xf0] %v321_v32  ;;  %v331_v33 = vpop.permute.xlu0 %330 }
  0xd4   : > { %v596_v30 = vsub.s32 (!%p798_p8), 0, %v595_v29  ;;  %v600_v31 = vsub.s32 (!%p798_p8), 1, %v595_v29  ;;  %v604_v32 = vsub.s32 (!%p798_p8), 2, %v595_v29 }
  0xd5   : > { %v333_v34 = vpop.permute.xlu1 %332 }
  0xd6   : > { %v338_v35 = vsel %vm336_vm5, %v331_v33, %v333_v34 }
  0xd7   : > { %344 = vst [vmem:[#allocation2 + $0x38] sm:$0xf] %v338_v35  ;;  %v349_v36 = vpop.permute.xlu0 %348  ;;  %v605_v35 = vrot.slane (!%p798_p8), %v1287_v24, %v604_v32 }
  0xd8   : > { %v422_v38 = vld [vmem:[#allocation2 + $0x18] sm:$0xff] }
  0xd9   : > { %v351_v39 = vpop.permute.xlu1 %350  ;;  %v825_v40 = vpack.c.bf16 %v422_v38, %v419_v37 }
  0xda   : > { %v356_v41 = vsel %vm354_vm6, %v349_v36, %v351_v39  ;;  %v424_v43 = vld [vmem:[#allocation2 + $0x28] sm:$0xff] }
  0xdb   : > { %362 = vst [vmem:[#allocation2 + $0x38] sm:$0xf0] %v356_v41  ;;  %v367_v44 = vpop.permute.xlu0 %366  ;;  %826 = vmatpush1.bf16.msra.mxu0 %v825_v40  ;;  %v832_v45 = vpack.c.bf16 %v424_v43, %v421_v42 }
  0xdd   : > { %833 = vmatpush3.bf16.msra.mxu1 %v832_v45  ;;  %v369_v46 = vpop.permute.xlu1 %368 }
  0xde   : > { %v374_v47 = vsel %vm372_vm7, %v367_v44, %v369_v46  ;;  %834 = vmatprep.subr.bf16.mxu1 %v1072_v7 }
  0xdf   : > { %380 = vst [vmem:[#allocation2 + $0x50] sm:$0xf] %v374_v47  ;;  %v385_v48 = vpop.permute.xlu0 %384 }
  0xe1   : > { %v387_v49 = vpop.permute.xlu1 %386 }
  0xe2   : > { %v392_v50 = vsel %vm390_vm8, %v385_v48, %v387_v49  ;;  %v426_v59 = vld [vmem:[#allocation2 + $0x38] sm:$0xff] }
  0xe3   : > { %398 = vst [vmem:[#allocation2 + $0x50] sm:$0xf0] %v392_v50  ;;  %v329_v51 = vpop.permute.xlu0 %328 }
  0xe4   : > { %v337_v52 = vsel %vm336_vm5, %v329_v51, %v331_v33  ;;  %v597_v33 = vrot.slane (!%p798_p8), %v1287_v24, %v596_v30 }
  0xe5   : > { %343 = vst [vmem:[#allocation2 + $0x30] sm:$0xf] %v337_v52  ;;  %v335_v53 = vpop.permute.xlu1 %334 }
  0xe6   : > { %v339_v54 = vsel %vm336_vm5, %v333_v34, %v335_v53  ;;  %v601_v34 = vrot.slane (!%p798_p8), %v1287_v24, %v600_v31 }
  0xe7   : > { %345 = vst [vmem:[#allocation2 + $0x40] sm:$0xf] %v339_v54  ;;  %v347_v55 = vpop.permute.xlu0 %346 }
  0xe8   : > { %v355_v56 = vsel %vm354_vm6, %v347_v55, %v349_v36 }
  0xe9   : > { %361 = vst [vmem:[#allocation2 + $0x30] sm:$0xf0] %v355_v56  ;;  %v353_v57 = vpop.permute.xlu1 %352 }
  0xea   : > { %v357_v58 = vsel %vm354_vm6, %v351_v39, %v353_v57  ;;  %v429_v60 = vld [vmem:[#allocation2 + $0x50] sm:$0xff] }
  0xeb   : > { %363 = vst [vmem:[#allocation2 + $0x40] sm:$0xf0] %v357_v58  ;;  %v365_v61 = vpop.permute.xlu0 %364  ;;  %v827_v62 = vpack.c.bf16 %v429_v60, %v426_v59 }
  0xec   : > { %v373_v63 = vsel %vm372_vm7, %v365_v61, %v367_v44 }
  0xed   : > { %379 = vst [vmem:[#allocation2 + $0x48] sm:$0xf] %v373_v63  ;;  %v371_v0 = vpop.permute.xlu1 %370  ;;  %828 = vmatprep.subr.bf16.mxu0 %v827_v62 }
  0xee   : > { %v375_v1 = vsel %vm372_vm7, %v369_v46, %v371_v0  ;;  %v612_v46 = vld [vmem:[#allocation3] sm:$0xff] (!%p798_p8) }
  0xef   : > { %381 = vst [vmem:[#allocation2 + $0x58] sm:$0xf] %v375_v1  ;;  %v383_v2 = vpop.permute.xlu0 %382 }
  0xf0   : > { %v391_v3 = vsel %vm390_vm8, %v383_v2, %v385_v48  ;;  %v425_v12 = vld [vmem:[#allocation2 + $0x30] sm:$0xff] }
  0xf1   : > { %397 = vst [vmem:[#allocation2 + $0x48] sm:$0xf0] %v391_v3  ;;  %v389_v4 = vpop.permute.xlu1 %388 }
  0xf2   : > { %v393_v5 = vsel %vm390_vm8, %v387_v49, %v389_v4  ;;  %v427_v17 = vld [vmem:[#allocation2 + $0x40] sm:$0xff] }
  0xf3   : > { %399 = vst [vmem:[#allocation2 + $0x58] sm:$0xf0] %v393_v5  ;;  %v403_v6 = vpop.permute.xlu0 %402  ;;  %v620_v49 = vld [vmem:[#allocation4] sm:$0xff] (!%p798_p8) }
  0xf5   : > { %v405_v7 = vpop.permute.xlu1 %404 }
  0xf6   : > { %v410_v9 = vsel %vm408_vm9, %v403_v6, %v405_v7 }
  0xf7   : > { %416 = vst [vmem:[#allocation2 + $0x68] sm:$0xf] %v410_v9  ;;  %v401_v10 = vpop.permute.xlu0 %400 }
  0xf8   : > { %v409_v11 = vsel %vm408_vm9, %v401_v10, %v403_v6  ;;  %v428_v13 = vld [vmem:[#allocation2 + $0x48] sm:$0xff] }
  0xf9   : > { %415 = vst [vmem:[#allocation2 + $0x60] sm:$0xf] %v409_v11  ;;  %v407_v14 = vpop.permute.xlu1 %406  ;;  %v829_v15 = vpack.c.bf16 %v428_v13, %v425_v12 }
  0xfa   : > { %v411_v16 = vsel %vm408_vm9, %v405_v7, %v407_v14  ;;  %v430_v18 = vld [vmem:[#allocation2 + $0x58] sm:$0xff] }
  0xfb   : > { %417 = vst [vmem:[#allocation2 + $0x70] sm:$0xf] %v411_v16  ;;  %830 = vmatpush1.bf16.msra.mxu0 %v829_v15  ;;  %v835_v19 = vpack.c.bf16 %v430_v18, %v427_v17 }
  0xfd   : > { %836 = vmatpush3.bf16.msra.mxu1 %v835_v19 }
  0xfe   : > { %v432_v20 = vld [vmem:[#allocation2 + $0x68] sm:$0xf]  ;;  %818 = vmatprep.subr.mxu1 %v1078_v8 }
  0xff   : > { %793 = vmatprep.subr.msk.mxu0 %vm438_vm10, %v432_v20 }
 0x100   : > { %v431_v22 = vld [vmem:[#allocation2 + $0x60] sm:$0xf] }
 0x101   : > { %794 = vmatpush1.msk.msra.mxu0 %vm438_vm10, %v431_v22 }
 0x102   : > { %795 = vmatmul.mubr.msk.f32.vlgmr.msra.gmra.mrb[0].mxu0 %vm434_vm11, %v418_v21  ;;  %v433_v23 = vld [vmem:[#allocation2 + $0x70] sm:$0xf] }
 0x103   : > { %819 = vmatpush3.msk.msra.mxu1 %vm438_vm10, %v433_v23 }
 0x104   : > { %821 = vmatmul.mubr.msk.f32.vlgmr.msra.gmra.mrb[0].mxu1 %vm434_vm11, %v418_v21 }
 0x1d2   : > { %592 = sbr.rel (%p798_p8) target bundleno = 626 (0x272), region = 52 }
 0x1d5   : > { %v514_v25 = vpop.f32.mrb[0].mxu0 }
 0x1d6   : > { %v516_v26 = vpop.f32.mrb[1].mxu0  ;;  %v609_v36 = vmul.f32 (!%p798_p8), %v597_v33, %v514_v25 }
 0x1d7   : > { %v585_v8 = vpop.f32.mrb[0].mxu1  ;;  %v610_v37 = vmul.f32 (!%p798_p8), %v601_v34, %v516_v26 }
 0x1d8   : > { %v822_v27 = vpop.f32.mrb[1].mxu1  ;;  %v611_v38 = vmul.f32 (!%p798_p8), %v605_v35, %v585_v8  ;;  %v621_v40 = vmul.f32 (!%p798_p8), %v609_v36, %v514_v25 }
 0x1d9   : > { %v613_v39 = vadd.f32 %v610_v37, %v609_v36  ;;  %v622_v41 = vmul.f32 %v610_v37, %v516_v26 }
 0x1da   : > { %v623_v42 = vmul.f32 %v611_v38, %v585_v8 }
 0x1db   : > { %v614_v43 = vadd.f32 %v613_v39, %v611_v38  ;;  %v624_v44 = vadd.f32 %v622_v41, %v621_v40 }
 0x1dd   : > { %615 = vadd.xlane.f32.xlu0 %v614_v43  ;;  %v625_v45 = vadd.f32 %v624_v44, %v623_v42 }
 0x1e1   : > { %626 = vadd.xlane.f32.xlu0 %v625_v45 }
 0x26a   : > { %v616_v47 = vpop.xlane.xlu0 %615 }
 0x26b   : > { %v617_v48 = vadd.f32 %v616_v47, %v612_v46 }
 0x26d   : > { %619 = vst.msk [vmem:[#allocation3] sm:$0xff] %vm618_vm12, %v617_v48 }
 0x26e   : > { %v627_v50 = vpop.xlane.xlu0 %626 }
 0x26f   : > { %v628_v51 = vadd.f32 %v627_v50, %v620_v49 }
 0x271   : > { %629 = vst.msk [vmem:[#allocation4] sm:$0xff] %vm618_vm12, %v628_v51 }
 0x272 PF: > { %p799_p7 = scmp.ne.s32.totalorder %s1053_s22, 1 }
 0x273   : > { %v1080_v54 = vmov (!%p799_p7), 0   ;;  %v640_v60 = vld [vmem:[%s1361_s2] sm:$0xff] (!%p799_p7)  ;;  %v667_v2 = vlaneseq (!%p799_p7) }
 0x274   : > { %633 = sbr.rel (%p799_p7) target bundleno = 792 (0x318), region = 56  ;;  %v634_v52 = vld [vmem:[#allocation3] sm:$0xff] (!%p799_p7)  ;;  %934 = vset.pattern.permute.xlu0 (!%p799_p7), %v1080_v54  ;;  %v644_v63 = vld [vmem:[%s1362_s3] sm:$0xff] (!%p799_p7) }
 0x275   : > { %v635_v55 = vmul.f32 (!%p799_p7), 0.001953125, %v634_v52  ;;  %v668_v3 = vshrl.u32 (!%p799_p7), %v667_v2, 7 }
 0x277   : > { %v638_v57 = vmul.f32 (!%p799_p7), %v635_v55, %v635_v55  ;;  %v669_v5 = vsub.s32 (!%p799_p7), 0, %v668_v3  ;;  %v673_v6 = vsub.s32 (!%p799_p7), 1, %v668_v3  ;;  %v677_v7 = vsub.s32 (!%p799_p7), 2, %v668_v3 }
 0x278   : > { %v636_v53 = vld [vmem:[#allocation4] sm:$0xff] (!%p799_p7) }
 0x279   : > { %v637_v56 = vmul.f32 (!%p799_p7), 0.001953125, %v636_v53  ;;  %v670_v12 = vrot.slane (!%p799_p7), %v1287_v24, %v669_v5  ;;  %v674_v13 = vrot.slane (!%p799_p7), %v1287_v24, %v673_v6  ;;  %v678_v15 = vrot.slane (!%p799_p7), %v1287_v24, %v677_v7 }
 0x27b   : > { %v639_v58 = vsub.f32 %v637_v56, %v638_v57 }
 0x27d   : > { %v641_v59 = vadd.f32 1e-05, %v639_v58 }
 0x27f   : > { %935 = vrsqrt.f32 %v641_v59 }
 0x289   : > { %v936_v61 = vpop.eup %935 }
 0x28a   : > { %v643_v62 = vmul.f32 %v936_v61, %v640_v60 }
 0x28c   : > { %649 = vperm.xlu0 %934, %v643_v62   ;;  %v645_v0 = vmul.f32 %v643_v62, %v635_v55 }
 0x28e   : > { %v646_v1 = vsub.f32 %v644_v63, %v645_v0 }
 0x290   : > { %657 = vperm.xlu0 %934, %v646_v1  }
 0x30b   : > { %v650_v4 = vpop.permute.xlu0 %649 }
 0x30c   : > { %v652_v9 = vmul.f32 %v650_v4, %v514_v25  ;;  %v653_v10 = vmul.f32 %v650_v4, %v516_v26  ;;  %v654_v11 = vmul.f32 %v650_v4, %v585_v8 }
 0x30f   : > { %v658_v14 = vpop.permute.xlu0 %657 }
 0x310   : > { %v660_v16 = vadd.f32 %v658_v14, %v652_v9  ;;  %v661_v17 = vadd.f32 %v658_v14, %v653_v10  ;;  %v662_v18 = vadd.f32 %v658_v14, %v654_v11 }
 0x312   : > { %v663_v19 = vmax.f32 %v660_v16, 0.0  ;;  %v664_v20 = vmax.f32 %v661_v17, 0.0  ;;  %v665_v21 = vmax.f32 %v662_v18, 0.0 }
 0x314   : > { %v682_v22 = vmul.f32 %v670_v12, %v663_v19  ;;  %v683_v23 = vmul.f32 %v674_v13, %v664_v20  ;;  %v684_v25 = vmul.f32 %v678_v15, %v665_v21 }
 0x316   : > { %685 = vst [vmem:[%s1253_s27] sm:$0xff] %v682_v22  ;;  %686 = vst [vmem:[%s1253_s27 + $0x8] sm:$0xff] %v683_v23 }
 0x317   : > { %687 = vst [vmem:[%s1253_s27 + $0x10] sm:$0xff] %v684_v25 }
 0x318 PF: > { %s838_s22 = smul.u32 384, %s1049_s21  ;;  %s703_s7 = sshll.u32 %s1253_s27, 4  ;;  %s704_s7 = int_to_ptr.vmem [resolvable:$true] %s703_s7 }
 0x319   : > { %s689_s30 = scalar_lea.sflag [#allocation7], %s1242_s14  ;;  %s967_s9 = scalar_lea.vmem %s704_s7, 384 }
 0x31a   : > { %s1311_s17 = scalar_lea.hbm %s1364_s5, %s838_s22  ;;  %p968_p12 = scmp.ne.s32.totalorder %s704_s7, %s967_s9 }
 0x31b   : > { %p1373_p4 = scmp.ne.s32.totalorder %s1368_s10, 0  ;;  %s1081_s6 = smov [#allocation8]  }
 0x31c   : > { %s971_s13 = sshll.u32 %s1081_s6, 4  ;;  %s972_s13 = int_to_ptr.vmem [resolvable:$false] %s971_s13 }
 0x31d   : > { %p969_p6 = pnand %p968_p12, %p1373_p4  ;;  %s973_s15 = scalar_lea.vmem %s972_s13, 768 }
 0x31e   : > { %p974_p9 = scmp.lt.s32.totalorder %s704_s7, %s972_s13  ;;  %p975_p10 = scmp.lt.s32.totalorder %s973_s15, %s967_s9 }
 0x31f   : > { %p970_p3 = pneg %p969_p6 }
 0x320   : > { %p976_p1 = por %p975_p10, %p974_p9 }
 0x322   : > { %p977_p2 = pnand %p976_p1, %p970_p3 }
 0x324   : > { %980 = shalt.err (!%p977_p2)
}
 0x325   : > { %s981_s21 = scalar_lea.hbm %s1311_s17, 384  ;;  %s985_s16 = scalar_lea.hbm %s1364_s5, 768 }
 0x326   : > { %p982_p5 = scmp.ne.s32.totalorder %s1311_s17, %s981_s21  ;;  %p986_p0 = scmp.lt.u32.totalorder %s1311_s17, %s1364_s5 }
 0x327   : > { %p987_p8 = scmp.lt.u32.totalorder %s985_s16, %s981_s21  ;;  %p989_p12 = scmp.lt.u32.totalorder %s981_s21, %s1311_s17 }
 0x328   : > { %p983_p11 = pnand %p982_p5, %p1373_p4 }
 0x329   : > { %p988_p7 = por %p987_p8, %p986_p0 }
 0x32a   : > { %p984_p13 = pneg %p983_p11 }
 0x32b   : > { %p990_p6 = por %p989_p12, %p988_p7 }
 0x32d   : > { %p991_p3 = pnand %p990_p6, %p984_p13 }
 0x32f   : > { %994 = shalt.err (!%p991_p3)
}
 0x330   : > { %841 = dma.vmem_to_hbm [thread:$0]  (%p1373_p4), %s704_s7, 384, %s1311_s17, %s689_s30  }
 0x331 PF: > { %p852_p9 = scmp.ge.s32.totalorder %s1065_s25, 2  ;;  %s715_s12 = sand.u32 1, %s1037_s18  }
 0x332   : > { %p1374_p10 = scmp.ne.s32.totalorder %s1369_s11, 0  ;;  %s716_s9 = scalar_lea.sflag [#allocation7], %s715_s12 }
 0x334   : > { %p848_p1 = pnand %p852_p9, %p1374_p10 }
 0x336   : > { %1032 = dma.done.wait (!%p848_p1), %s716_s9, 384  }
 0x337   : > { %1034 = vsyncadd (!%p848_p1), %s716_s9, 4294966912  ;;  %s21_s25 = sadd.s32 1, %s1065_s25   ;;  %s1375_s18 = smov %s1041_s19 }
 0x338   : > { %p18_p2 = scmp.ge.s32.totalorder %s21_s25, 6   ;;  %s1376_s19 = smov %s1045_s20 }
 0x339   : > { %s1377_s20 = smov %s1177_s8  ;;  %s1378_s21 = smov %s1057_s23 }
 0x33a   : > { %s1379_s22 = smov %s1061_s24  ;;  %s1380_s23 = smov %s1383_s28 }
 0x33b   : > { %s1381_s24 = smov %s1387_s29  ;;  %20 = sbr.rel (!%p18_p2) target bundleno = 7 (0x7), region = 97 }
 0x342   :  { %721 = vsyncpa [#allocation6], 1 }
 0x343   :  { %723 = vsyncpa [#allocation6 + $0x1], 1 }
 0x344   :  { %724 = vsyncpa [#allocation7], 1 }
 0x345   :  { %726 = vsyncpa [#allocation7 + $0x1], 1 }

</bundles_post_ra>
